<compile_context>
chip_gen: v7x
topology: tpu7x:2x2x1
jax: 0.10.0
libtpu: 0.0.40
codegen_flags: <defaults>
</compile_context>

<pallas_src>
import functools

import jax
import jax.numpy as jnp
from jax import lax
from jax.experimental import pallas as pl
from jax.experimental.pallas import tpu as pltpu


def _haar_kernel(x_ref, halo_ref, o_ref, *, TH, W):
    img = x_ref[0]                 # (TH, W) current row tile
    halo = halo_ref[0, 0]          # (1, W)  first row of the next tile
                                   #          (zeros at the image bottom)

    lane = lax.broadcasted_iota(jnp.int32, (TH, W), 1)
    has_right = lane < (W - 1)

    # x[i, j+1]: single-step lane rotation, zero the wrapped last column
    # (reproduces the asymmetric 'same' right padding).
    right = pltpu.roll(img, shift=W - 1, axis=1) if W > 1 else img
    x01 = jnp.where(has_right, right, 0.0)

    # x[i+1, j]: single-step sublane rotation; the wrapped last row is replaced
    # by the halo row (real next row, or zeros past the bottom edge).
    if TH > 1:
        row = lax.broadcasted_iota(jnp.int32, (TH, W), 0)
        down = pltpu.roll(img, shift=TH - 1, axis=0)
        x10 = jnp.where(row < (TH - 1), down, jnp.broadcast_to(halo, (TH, W)))
    else:
        x10 = jnp.broadcast_to(halo, (TH, W))

    # x[i+1, j+1]: lane-rotate the already bottom-correct x10 and reuse the
    # right-edge mask (no extra AND, no modulo).
    diag = pltpu.roll(x10, shift=W - 1, axis=1) if W > 1 else x10
    x11 = jnp.where(has_right, diag, 0.0)

    a = img + x01        # top-row sum
    b = x10 + x11        # bottom-row sum
    c = img - x01        # top-row difference
    d = x10 - x11        # bottom-row difference

    o_ref[0, 0, :, :] = a - b    # kernel [[ 1,  1], [-1, -1]]
    o_ref[0, 1, :, :] = c + d    # kernel [[ 1, -1], [ 1, -1]]
    o_ref[0, 2, :, :] = c - d    # kernel [[ 1, -1], [-1,  1]]


def _pick_tile_rows(H, W, max_tile_elems):
    """Largest multiple-of-8 divisor of H with TH*W <= max_tile_elems, else H."""
    limit = max(8, max_tile_elems // max(W, 1))
    best = None
    th = 8
    while th <= min(H, limit):
        if H % th == 0:
            best = th
        th += 8
    return best if best is not None else H


def haar_features(x, *, max_tile_elems=256 * 1024):
    """x: (B, 1, H, W). Returns (B, 3, H, W) float32 (== torch HaarFeatures)."""
    B, C, H, W = x.shape
    if C != 1:
        # F.conv2d with a (1, 1, 2, 2) weight requires a single input channel,
        # exactly like the PyTorch reference.
        raise ValueError(f"HaarFeatures expects a single-channel input, got C={C}")

    x_img = x.astype(jnp.float32).reshape(B, H, W)

    TH = _pick_tile_rows(H, W, max_tile_elems)   # ~1 MiB f32 input tile max
    R = H // TH

    # halo[b, r] = image row (r+1)*TH (zeros past the bottom edge) -> the real
    # next row at every tile seam, and the 'same'-padding zero row at the end.
    halo = jnp.pad(x_img, ((0, 0), (0, 1), (0, 0)))[:, TH::TH, :]
    halo = halo.reshape(B, R, 1, W)

    kernel = functools.partial(_haar_kernel, TH=TH, W=W)

    out = pl.pallas_call(
        kernel,
        out_shape=jax.ShapeDtypeStruct((B, 3, H, W), jnp.float32),
        grid_spec=pltpu.PrefetchScalarGridSpec(
            num_scalar_prefetch=0,
            grid=(B, R),
            in_specs=[
                pl.BlockSpec((1, TH, W), lambda b, r: (b, r, 0)),
                pl.BlockSpec((1, 1, 1, W), lambda b, r: (b, r, 0, 0)),
            ],
            out_specs=pl.BlockSpec((1, 3, TH, W), lambda b, r: (b, 0, r, 0)),
        ),
        compiler_params=pltpu.CompilerParams(
            dimension_semantics=("parallel", "parallel"),
        ),
    )(x_img, halo)

    return out


def _reference(x):
    """Pure-JAX reference of the torch 'same'-padded 2x2 convs."""
    B, C, H, W = x.shape
    img = x[:, 0].astype(jnp.float32)
    xp = jnp.pad(img, ((0, 0), (0, 1), (0, 1)))
    x00 = xp[:, :H, :W]
    x01 = xp[:, :H, 1:W + 1]
    x10 = xp[:, 1:H + 1, :W]
    x11 = xp[:, 1:H + 1, 1:W + 1]
    return jnp.stack([x00 + x01 - x10 - x11,
                      x00 - x01 + x10 - x11,
                      x00 - x01 - x10 + x11], axis=1)


if __name__ == "__main__":
    key = jax.random.PRNGKey(0)
    k1, k2 = jax.random.split(key)

    # Small single-tile case (whole 16x16 image per grid step).
    B, C, H, W = 2, 1, 16, 16
    x = jax.random.normal(k1, (B, C, H, W), dtype=jnp.float32)
    out = jax.block_until_ready(jax.jit(haar_features)(x))
    assert out.shape == (B, 3, H, W), out.shape
    assert out.dtype == jnp.float32
    assert bool(jnp.all(jnp.isfinite(out)))
    ref = _reference(x)
    assert bool(jnp.allclose(out, ref, atol=1e-5, rtol=1e-5)), \
        float(jnp.max(jnp.abs(out - ref)))

    # Multi-row-tile case (forces TH=8, R=8) to exercise the halo at tile seams.
    B2, H2, W2 = 2, 64, 128
    x2 = jax.random.normal(k2, (B2, 1, H2, W2), dtype=jnp.float32)
    out2 = jax.block_until_ready(
        jax.jit(functools.partial(haar_features, max_tile_elems=1024))(x2))
    ref2 = _reference(x2)
    assert bool(jnp.allclose(out2, ref2, atol=1e-5, rtol=1e-5)), \
        float(jnp.max(jnp.abs(out2 - ref2)))

    print("KERNEL_OK")
</pallas_src>

<mosaic_0001>
module attributes {stable_mosaic.version = 11 : i64} {
  func.func @_haar_kernel(%arg0: i32, %arg1: i32, %arg2: memref<1x16x16xf32, #tpu.memory_space<vmem>>, %arg3: memref<1x1x1x16xf32, #tpu.memory_space<vmem>>, %arg4: memref<1x3x16x16xf32, #tpu.memory_space<vmem>>) attributes {dimension_semantics = [#tpu.dimension_semantics<parallel>, #tpu.dimension_semantics<parallel>], iteration_bounds = array<i64: 2, 1>, scalar_prefetch = 0 : i64, scratch_operands = 0 : i64, tpu.core_type = #tpu.core_type<tc>, window_params = [{transform_indices = @transform_0, window_bounds = array<i64: 1, 16, 16>}, {transform_indices = @transform_1, window_bounds = array<i64: 1, 1, 1, 16>}, {transform_indices = @transform_2, window_bounds = array<i64: 1, 3, 16, 16>}]} {
    %c0 = arith.constant 0 : index
    %c0_0 = arith.constant 0 : index
    %c0_1 = arith.constant 0 : index
    %0 = vector.load %arg2[%c0, %c0_0, %c0_1] : memref<1x16x16xf32, #tpu.memory_space<vmem>>, vector<1x16x16xf32>
    %1 = vector.shape_cast %0 : vector<1x16x16xf32> to vector<16x16xf32>
    %c0_2 = arith.constant 0 : index
    %c0_3 = arith.constant 0 : index
    %c0_4 = arith.constant 0 : index
    %c0_5 = arith.constant 0 : index
    %2 = vector.load %arg3[%c0_2, %c0_3, %c0_4, %c0_5] : memref<1x1x1x16xf32, #tpu.memory_space<vmem>>, vector<1x1x1x16xf32>
    %3 = vector.shape_cast %2 : vector<1x1x1x16xf32> to vector<1x16xf32>
    %4 = tpu.iota {dimensions = array<i32: 1>} : vector<16x16xi32>
    %c15_i32 = arith.constant 15 : i32
    %5 = vector.broadcast %c15_i32 : i32 to vector<16x16xi32>
    %6 = arith.cmpi slt, %4, %5 : vector<16x16xi32>
    %c15_i32_6 = arith.constant 15 : i32
    %7 = tpu.dynamic_rotate %1 by %c15_i32_6 dim 1 : vector<16x16xf32>, i32 -> vector<16x16xf32>
    %cst = arith.constant 0.000000e+00 : f32
    %8 = vector.broadcast %cst : f32 to vector<16x16xf32>
    %9 = arith.select %6, %7, %8 : vector<16x16xi1>, vector<16x16xf32>
    %10 = tpu.iota {dimensions = array<i32: 0>} : vector<16x16xi32>
    %c15_i32_7 = arith.constant 15 : i32
    %11 = tpu.dynamic_rotate %1 by %c15_i32_7 dim 0 : vector<16x16xf32>, i32 -> vector<16x16xf32>
    %c15_i32_8 = arith.constant 15 : i32
    %12 = vector.broadcast %c15_i32_8 : i32 to vector<16x16xi32>
    %13 = arith.cmpi slt, %10, %12 : vector<16x16xi32>
    %14 = vector.shape_cast %3 : vector<1x16xf32> to vector<1x16xf32>
    %15 = vector.broadcast %14 : vector<1x16xf32> to vector<16x16xf32>
    %16 = arith.select %13, %11, %15 : vector<16x16xi1>, vector<16x16xf32>
    %c15_i32_9 = arith.constant 15 : i32
    %17 = tpu.dynamic_rotate %16 by %c15_i32_9 dim 1 : vector<16x16xf32>, i32 -> vector<16x16xf32>
    %cst_10 = arith.constant 0.000000e+00 : f32
    %18 = vector.broadcast %cst_10 : f32 to vector<16x16xf32>
    %19 = arith.select %6, %17, %18 : vector<16x16xi1>, vector<16x16xf32>
    %20 = arith.addf %1, %9 : vector<16x16xf32>
    %21 = arith.addf %16, %19 : vector<16x16xf32>
    %22 = arith.subf %1, %9 : vector<16x16xf32>
    %23 = arith.subf %16, %19 : vector<16x16xf32>
    %24 = arith.subf %20, %21 : vector<16x16xf32>
    %c0_11 = arith.constant 0 : index
    %c0_12 = arith.constant 0 : index
    %c0_13 = arith.constant 0 : index
    %c0_14 = arith.constant 0 : index
    %25 = vector.load %arg4[%c0_11, %c0_12, %c0_13, %c0_14] : memref<1x3x16x16xf32, #tpu.memory_space<vmem>>, vector<1x1x16x16xf32>
    %26 = vector.shape_cast %25 : vector<1x1x16x16xf32> to vector<16x16xf32>
    %27 = vector.shape_cast %24 : vector<16x16xf32> to vector<1x1x16x16xf32>
    tpu.vector_store %arg4[%c0_11, %c0_12, %c0_13, %c0_14], %27 {strides = array<i32>} : memref<1x3x16x16xf32, #tpu.memory_space<vmem>>, vector<1x1x16x16xf32>,
    %28 = arith.addf %22, %23 : vector<16x16xf32>
    %c0_15 = arith.constant 0 : index
    %c1 = arith.constant 1 : index
    %c0_16 = arith.constant 0 : index
    %c0_17 = arith.constant 0 : index
    %29 = vector.load %arg4[%c0_15, %c1, %c0_16, %c0_17] : memref<1x3x16x16xf32, #tpu.memory_space<vmem>>, vector<1x1x16x16xf32>
    %30 = vector.shape_cast %29 : vector<1x1x16x16xf32> to vector<16x16xf32>
    %31 = vector.shape_cast %28 : vector<16x16xf32> to vector<1x1x16x16xf32>
    tpu.vector_store %arg4[%c0_15, %c1, %c0_16, %c0_17], %31 {strides = array<i32>} : memref<1x3x16x16xf32, #tpu.memory_space<vmem>>, vector<1x1x16x16xf32>,
    %32 = arith.subf %22, %23 : vector<16x16xf32>
    %c0_18 = arith.constant 0 : index
    %c2 = arith.constant 2 : index
    %c0_19 = arith.constant 0 : index
    %c0_20 = arith.constant 0 : index
    %33 = vector.load %arg4[%c0_18, %c2, %c0_19, %c0_20] : memref<1x3x16x16xf32, #tpu.memory_space<vmem>>, vector<1x1x16x16xf32>
    %34 = vector.shape_cast %33 : vector<1x1x16x16xf32> to vector<16x16xf32>
    %35 = vector.shape_cast %32 : vector<16x16xf32> to vector<1x1x16x16xf32>
    tpu.vector_store %arg4[%c0_18, %c2, %c0_19, %c0_20], %35 {strides = array<i32>} : memref<1x3x16x16xf32, #tpu.memory_space<vmem>>, vector<1x1x16x16xf32>,
    return
  }
  func.func @transform_0(%arg0: i32, %arg1: i32) -> (i32, i32, i32) {
    %c0_i32 = arith.constant 0 : i32
    %c0_i32_0 = arith.constant 0 : i32
    return %arg0, %arg1, %c0_i32 : i32, i32, i32
  }
  func.func @transform_1(%arg0: i32, %arg1: i32) -> (i32, i32, i32, i32) {
    %c0_i32 = arith.constant 0 : i32
    %c0_i32_0 = arith.constant 0 : i32
    %c0_i32_1 = arith.constant 0 : i32
    return %arg0, %arg1, %c0_i32, %c0_i32_0 : i32, i32, i32, i32
  }
  func.func @transform_2(%arg0: i32, %arg1: i32) -> (i32, i32, i32, i32) {
    %c0_i32 = arith.constant 0 : i32
    %c0_i32_0 = arith.constant 0 : i32
    %c0_i32_1 = arith.constant 0 : i32
    return %arg0, %c0_i32, %arg1, %c0_i32_0 : i32, i32, i32, i32
  }
}

</mosaic_0001>

<bundles_post_ra>
// kernel: haar_features.1
= control target key start
LH: loop header
LB: loop body
LE: loop exit
PB: predicated region body
PF: predicated region fallthrough
CT: control target
= control target key end

     0   :  { %7 = vsyncpa [#allocation3], 0  ;;  %s846_s0 = inlined_call_operand.hbm [shape: f32[2,16,16], index: 0, kind: input, shape index: {}]   ;;  %s847_s1 = inlined_call_operand.vmem [shape: f32[2,1,1,16], index: 1, kind: input, shape index: {}]   ;;  %s848_s2 = inlined_call_operand.hbm [shape: f32[2,3,16,16], index: 2, kind: output, shape index: {}]  }
   0x1   :  { %9 = vsyncpa [#allocation3 + $0x1], 0 }
   0x2   :  { %10 = vsyncpa [#allocation4], 0 }
   0x3   :  { %12 = vsyncpa [#allocation4 + $0x1], 0  ;;  %s639_s9 = smov 0   ;;  %s641_s10 = smov 0  }
   0x4   :  { %s643_s11 = smov 0   ;;  %s645_s12 = smov 0  }
   0x5   :  { %s647_s13 = smov 0   ;;  %s649_s14 = smov 0  }
   0x6 LB: > { %s414_s15 = sadd.s32 4294967295, %s614_s14   ;;  %s415_s16 = sadd.s32 4294967294, %s614_s14   ;;  %s614_s14 = sphi %s649_s14, %s18_s14   ;;  %s610_s13 = sphi %s647_s13, %s863_s13   ;;  %s606_s12 = sphi %s645_s12, %s862_s12   ;;  %s602_s11 = sphi %s643_s11, %s861_s11   ;;  %s598_s10 = sphi %s641_s10, %s860_s10   ;;  %s594_s9 = sphi %s639_s9, %s859_s9  }
   0x7   : > { %s30_s17 = sadd.s32 1, %s610_s13  ;;  %s39_s18 = sadd.s32 1, %s602_s11 }
   0x8   : > { %p32_p0 = scmp.ge.s32.totalorder %s30_s17, 2  ;;  %p46_p1 = scmp.ne.s32.totalorder %s602_s11, %s598_s10 }
   0x9   : > { %p47_p2 = scmp.eq.s32.totalorder %s614_s14, 0  ;;  %p52_p3 = scmp.ne.s32.totalorder %s598_s10, %s594_s9 }
   0xa   : > { %s865_s17 = smov (%p32_p0, %s30_s17), 0  ;;  %p53_p5 = scmp.eq.s32.totalorder %s414_s15, 0 }
   0xb   : > { %p680_p4 = por %p47_p2, %p46_p1  ;;  %s34_s20 = ssub.s32 %s610_s13, %s865_s17 }
   0xc   : > { %p106_p6 = scmp.eq.s32.totalorder %s414_s15, 1  ;;  %p37_p7 = scmp.eq.s32.totalorder %s34_s20, 0 }
   0xd   : > { %p686_p8 = por %p53_p5, %p52_p3  ;;  %p112_p10 = scmp.eq.s32.totalorder %s415_s16, 1 }
   0xe   : > { %p690_p9 = por %p106_p6, %p46_p1  ;;  %p446_p13 = scmp.lt.s32.totalorder %s614_s14, 2 }
   0xf   : > { %s695_s23 = scalar_select %p37_p7, %s602_s11, %s39_s18  }
  0x10   : > { %s852_s22 = scalar_select %p690_p9, 1, 0 }
  0x11   : > { %p697_p11 = por %p112_p10, %p52_p3  ;;  %s132_s25 = sand.u32 1, %s602_s11  }
  0x12   : > { %s418_s26 = sshll.u32 %s132_s25, 4  ;;  %s431_s27 = sshll.u32 %s610_s13, 8 }
  0x13   : > { %s853_s24 = scalar_select %p697_p11, 1, 0 }
  0x14   : > { %s708_s30 = scalar_lea.hbm %s846_s0, %s431_s27  ;;  %s136_s3 = scalar_lea.vmem [#allocation2], %s418_s26 }
  0x15   : > { %s145_s4 = sshll.u32 %s136_s3, 4  ;;  %p714_p0 = pnand %p446_p13, %p680_p4  ;;  %s710_s4 = int_to_ptr.vmem [resolvable:$true] %s145_s4 }
  0x16   : > { %s719_s6 = scalar_lea.sflag [#allocation3], %s132_s25  ;;  %s502_s7 = scalar_lea.hbm %s708_s30, 256 }
  0x17   : > { %p503_p2 = scmp.ne.s32.totalorder %s708_s30, %s502_s7  ;;  %p504_p3 = pneg %p714_p0 }
  0x18   : > { %s507_s16 = scalar_lea.hbm %s846_s0, 512  ;;  %p508_p4 = scmp.lt.u32.totalorder %s708_s30, %s846_s0 }
  0x19   : > { %p505_p5 = pnand %p504_p3, %p503_p2  ;;  %p509_p7 = scmp.lt.u32.totalorder %s507_s16, %s502_s7 }
  0x1a   : > { %p511_p13 = scmp.lt.u32.totalorder %s502_s7, %s708_s30 }
  0x1b   : > { %p506_p6 = pneg %p505_p5  ;;  %p510_p10 = por %p509_p7, %p508_p4 }
  0x1d   : > { %p512_p12 = por %p511_p13, %p510_p10 }
  0x1f   : > { %p513_p1 = pnand %p512_p12, %p506_p6 }
  0x21   : > { %516 = shalt.err (!%p513_p1)
}
  0x22   : > { %s517_s20 = scalar_lea.vmem %s710_s4, 256  ;;  %s616_s25 = smov [#allocation2]  }
  0x23   : > { %p518_p2 = scmp.ne.s32.totalorder %s710_s4, %s517_s20  ;;  %s522_s26 = sshll.u32 %s616_s25, 4  ;;  %s523_s26 = int_to_ptr.vmem [resolvable:$false] %s522_s26 }
  0x24   : > { %s524_s27 = scalar_lea.vmem %s523_s26, 512  ;;  %p525_p9 = scmp.lt.s32.totalorder %s710_s4, %s523_s26 }
  0x25   : > { %p520_p5 = pnand %p518_p2, %p504_p3  ;;  %p526_p4 = scmp.lt.s32.totalorder %s524_s27, %s517_s20 }
  0x27   : > { %p521_p11 = pneg %p520_p5  ;;  %p527_p7 = por %p526_p4, %p525_p9 }
  0x29   : > { %p528_p10 = pnand %p527_p7, %p521_p11 }
  0x2b   : > { %531 = shalt.err (!%p528_p10)
}
  0x2c   : > { %s617_s28 = smov 128   ;;  %s618_s29 = smov 8  }
  0x2d   : > { %441 = dma.hbm_to_vmem [thread:$0]  (!%p714_p0), %s708_s30, 256, %s710_s4, %s719_s6, %s617_s28, %s617_s28, %s618_s29  }
  0x2e   : > { %p162_p12 = scmp.lt.s32.totalorder %s614_s14, 3  ;;  %p855_p1 = scmp.ge.s32.totalorder %s614_s14, 1 }
  0x30   : > { %p163_p3 = pnand %p855_p1, %p162_p12 }
  0x31   : > { %s751_s3 = sand.u32 (!%p163_p3), 1, %s598_s10  }
  0x32   : > { %166 = sbr.rel (%p163_p3) target bundleno = 436 (0x1b4), region = 28  ;;  %s422_s7 = sshll.u32 (!%p163_p3), %s751_s3, 4 }
  0x33   : > { %s169_s8 = scalar_lea.sflag (!%p163_p3), [#allocation3], %s751_s3  ;;  %s172_s15 = scalar_lea.vmem (!%p163_p3), [#allocation2], %s422_s7 }
  0x39   : > { %585 = dma.done.wait (%p686_p8), %s169_s8, 256  }
  0x3a   : > { %587 = vsyncadd (%p686_p8), %s169_s8, 4294967040  ;;  %v210_v0 = vlaneseq  ;;  %p200_p9 = scmp.lt.s32.totalorder %s606_s12, 1  ;;  %v207_v3 = vld [vmem:[%s172_s15] sm:$0xff]  ;;  %v764_v4 = vld [vmem:[%s172_s15 + $0x8] sm:$0xff]  ;;  %s619_s16 = smov 16   ;;  %vm213_vm2 = vcmask 1047680  }
  0x3b   : > { %214 = vrot.lane.b32.xlu0 %v207_v3, %s619_s16  ;;  %v239_v5 = vrot.slane %v207_v3, 1  ;;  %v240_v6 = vrot.slane %v764_v4, 1  ;;  %s620_s21 = smov 127   ;;  %s432_s18 = smul.u32 48, %s751_s3  ;;  %vm286_vm4 = vcmask 130048  }
  0x3c   : > { %s201_s30 = scalar_select %p200_p9, %s606_s12, 1  ;;  %v237_v1 = vshrl.u32 %v210_v0, 7  ;;  %v211_v27 = vand.u32 127, %v210_v0 }
  0x3d   : > { %s433_s19 = smul.u32 768, %s606_s12  ;;  %s198_s20 = scalar_lea.vmem [#allocation5], %s432_s18 }
  0x3e   : > { %v238_v2 = vadd.s32 8, %v237_v1  ;;  %s205_s6 = scalar_lea.vmem %s847_s1, %s201_s30  ;;  %vm241_vm0 = vcmp.lt.s32.totalorder %v237_v1, 7  ;;  %vm212_vm3 = vcmp.lt.s32.totalorder %v211_v27, 15  ;;  %s315_s25 = sshll.u32 %s198_s20, 4  ;;  %s794_s25 = int_to_ptr.vmem [resolvable:$true] %s315_s25 }
  0x3f   : > { %v423_v7 = vld [vmem:[%s205_s6] ss:$0 sm:$0xff]  ;;  %v242_v8 = vsel %vm241_vm0, %v239_v5, %v240_v6  ;;  %v243_v9 = vsel %vm241_vm0, %v240_v6, %v239_v5  ;;  %217 = vrot.lane.b32.xlu0 %v764_v4, %s619_s16  ;;  %s792_s27 = scalar_lea.hbm %s848_s2, %s433_s19  ;;  %s300_s28 = scalar_lea.sflag [#allocation4], %s751_s3 }
  0x40   : > { %vm245_vm1 = vcmp.lt.s32.totalorder %v238_v2, 15  ;;  %254 = vrot.lane.b32.xlu1 %v242_v8, %s619_s16  ;;  %s532_s29 = scalar_lea.vmem %s794_s25, 768  ;;  %p856_p11 = scmp.ne.s32.totalorder %s852_s22, 0 }
  0x41   : > { %v253_v10 = vsel %vm245_vm1, %v243_v9, %v423_v7  ;;  %p533_p8 = scmp.ne.s32.totalorder %s794_s25, %s532_s29  ;;  %s621_s7 = smov [#allocation5]  }
  0x42   : > { %s536_s8 = sshll.u32 %s621_s7, 4  ;;  %s537_s8 = int_to_ptr.vmem [resolvable:$false] %s536_s8 }
  0x43   : > { %p534_p0 = pnand %p533_p8, %p856_p11  ;;  %s538_s15 = scalar_lea.vmem %s537_s8, 1536 }
  0x44   : > { %257 = vrot.lane.b32.xlu1 %v253_v10, %s619_s16  ;;  %p539_p13 = scmp.lt.s32.totalorder %s794_s25, %s537_s8  ;;  %p540_p2 = scmp.lt.s32.totalorder %s538_s15, %s532_s29 }
  0x45   : > { %p535_p6 = pneg %p534_p0 }
  0x46   : > { %p541_p5 = por %p540_p2, %p539_p13 }
  0x48   : > { %p542_p4 = pnand %p541_p5, %p535_p6 }
  0xad   : > { %v215_v11 = vpop.permute.xlu0 %214 }
  0xae   : > { %v216_v12 = vsel %vm213_vm2, %v215_v11, %v207_v3 }
  0xaf   : > { %220 = vrot.lane.b32.xlu0 %v216_v12, %s619_s16 }
  0xb1   : > { %v218_v14 = vpop.permute.xlu0 %217 }
  0xb2   : > { %v255_v13 = vpop.permute.xlu1 %254  ;;  %v219_v16 = vsel %vm213_vm2, %v218_v14, %v764_v4 }
  0xb3   : > { %v256_v15 = vsel %vm213_vm2, %v255_v13, %v242_v8  ;;  %222 = vrot.lane.b32.xlu1 %v219_v16, %s619_s16 }
  0xb4   : > { %260 = vrot.lane.b32.xlu0 %v256_v15, %s619_s16 }
  0xb6   : > { %v258_v17 = vpop.permute.xlu1 %257 }
  0xb7   : > { %v259_v18 = vsel %vm213_vm2, %v258_v17, %v253_v10 }
  0xb8   : > { %262 = vrot.lane.b32.xlu1 %v259_v18, %s619_s16 }
 0x121   : > { %v221_v19 = vpop.permute.xlu0 %220 }
 0x122   : > { %v224_v20 = vsel %vm213_vm2, %v221_v19, %v207_v3 }
 0x123   : > { %228 = vrot.lane.b32.xlu0 %v224_v20, %s620_s21 }
 0x125   : > { %v223_v22 = vpop.permute.xlu1 %222 }
 0x126   : > { %v261_v21 = vpop.permute.xlu0 %260  ;;  %v225_v24 = vsel %vm213_vm2, %v223_v22, %v764_v4 }
 0x127   : > { %v264_v23 = vsel %vm213_vm2, %v261_v21, %v242_v8  ;;  %230 = vrot.lane.b32.xlu1 %v225_v24, %s620_s21 }
 0x128   : > { %268 = vrot.lane.b32.xlu0 %v264_v23, %s620_s21 }
 0x12a   : > { %v263_v25 = vpop.permute.xlu1 %262 }
 0x12b   : > { %v265_v26 = vsel %vm213_vm2, %v263_v25, %v253_v10 }
 0x12c   : > { %270 = vrot.lane.b32.xlu1 %v265_v26, %s620_s21 }
 0x195   : > { %v229_v28 = vpop.permute.xlu0 %228 }
 0x196   : > { %v234_v29 = vsel %vm212_vm3, %v229_v28, 0.0 }
 0x197   : > { %v276_v33 = vadd.f32 %v234_v29, %v207_v3  ;;  %v280_v34 = vsub.f32 %v207_v3, %v234_v29 }
 0x199   : > { %v231_v31 = vpop.permute.xlu1 %230 }
 0x19a   : > { %v269_v30 = vpop.permute.xlu0 %268  ;;  %v235_v37 = vsel %vm212_vm3, %v231_v31, 0.0 }
 0x19b   : > { %v274_v32 = vsel %vm212_vm3, %v269_v30, 0.0  ;;  %v277_v43 = vadd.f32 %v235_v37, %v764_v4  ;;  %v281_v44 = vsub.f32 %v764_v4, %v235_v37 }
 0x19c   : > { %v278_v35 = vadd.f32 %v274_v32, %v242_v8  ;;  %v282_v36 = vsub.f32 %v242_v8, %v274_v32 }
 0x19e   : > { %v284_v38 = vsub.f32 %v276_v33, %v278_v35  ;;  %v289_v39 = vadd.f32 %v282_v36, %v280_v34  ;;  %v294_v40 = vsub.f32 %v280_v34, %v282_v36  ;;  %v271_v41 = vpop.permute.xlu1 %270 }
 0x19f   : > { %v275_v42 = vsel %vm212_vm3, %v271_v41, 0.0 }
 0x1a0   : > { %287 = vst.msk [vmem:[%s198_s20] sm:$0xff] %vm286_vm4, %v284_v38  ;;  %424 = vst.msk [vmem:[%s198_s20 + $0x10] sm:$0xff] %vm286_vm4, %v289_v39  ;;  %v279_v45 = vadd.f32 %v275_v42, %v253_v10  ;;  %v283_v46 = vsub.f32 %v253_v10, %v275_v42 }
 0x1a1   : > { %426 = vst.msk [vmem:[%s198_s20 + $0x20] sm:$0xff] %vm286_vm4, %v294_v40 }
 0x1a2   : > { %v285_v47 = vsub.f32 %v277_v43, %v279_v45  ;;  %v290_v48 = vadd.f32 %v283_v46, %v281_v44  ;;  %v295_v49 = vsub.f32 %v281_v44, %v283_v46 }
 0x1a4   : > { %288 = vst.msk [vmem:[%s198_s20 + $0x8] sm:$0xff] %vm286_vm4, %v285_v47  ;;  %425 = vst.msk [vmem:[%s198_s20 + $0x18] sm:$0xff] %vm286_vm4, %v290_v48 }
 0x1a5   : > { %427 = vst.msk [vmem:[%s198_s20 + $0x28] sm:$0xff] %vm286_vm4, %v295_v49 }
 0x1a6   : > { %545 = shalt.err (!%p542_p4)
}
 0x1a7   : > { %s546_s30 = scalar_lea.hbm %s792_s27, 768  ;;  %s550_s6 = scalar_lea.hbm %s848_s2, 1536 }
 0x1a8   : > { %p547_p7 = scmp.ne.s32.totalorder %s792_s27, %s546_s30  ;;  %p551_p1 = scmp.lt.u32.totalorder %s792_s27, %s848_s2 }
 0x1a9   : > { %p552_p3 = scmp.lt.u32.totalorder %s550_s6, %s546_s30  ;;  %p554_p8 = scmp.lt.u32.totalorder %s546_s30, %s792_s27 }
 0x1aa   : > { %p548_p10 = pnand %p547_p7, %p856_p11 }
 0x1ab   : > { %p553_p9 = por %p552_p3, %p551_p1 }
 0x1ac   : > { %p549_p12 = pneg %p548_p10 }
 0x1ad   : > { %p555_p0 = por %p554_p8, %p553_p9 }
 0x1af   : > { %p556_p6 = pnand %p555_p0, %p549_p12 }
 0x1b1   : > { %559 = shalt.err (!%p556_p6)
}
 0x1b2   : > { %s622_s18 = smov 128   ;;  %s623_s19 = smov 8  }
 0x1b3   : > { %436 = dma.vmem_to_hbm [thread:$0]  (%p856_p11), %s794_s25, 768, %s792_s27, %s300_s28, %s622_s18, %s622_s18, %s623_s19  }
 0x1b4 PF: > { %s330_s20 = sand.u32 1, %s594_s9   ;;  %p857_p13 = scmp.ne.s32.totalorder %s853_s24, 0 }
 0x1b5   : > { %p858_p2 = scmp.ge.s32.totalorder %s614_s14, 2  ;;  %s331_s12 = scalar_lea.sflag [#allocation4], %s330_s20 }
 0x1b7   : > { %p443_p5 = pnand %p858_p2, %p857_p13 }
 0x1b9   : > { %589 = dma.done.wait (!%p443_p5), %s331_s12, 768  }
 0x1ba   : > { %591 = vsyncadd (!%p443_p5), %s331_s12, 4294966528  ;;  %s18_s14 = sadd.s32 1, %s614_s14   ;;  %s859_s9 = smov %s598_s10 }
 0x1bb   : > { %p15_p4 = scmp.ge.s32.totalorder %s18_s14, 4   ;;  %s860_s10 = smov %s602_s11 }
 0x1bc   : > { %s861_s11 = smov %s695_s23  ;;  %s862_s12 = smov %s610_s13 }
 0x1bd   : > { %s863_s13 = smov %s865_s17  ;;  %17 = sbr.rel (!%p15_p4) target bundleno = 6 (0x6), region = 78 }
 0x1c4   :  { %336 = vsyncpa [#allocation3], 1 }
 0x1c5   :  { %338 = vsyncpa [#allocation3 + $0x1], 1 }
 0x1c6   :  { %339 = vsyncpa [#allocation4], 1 }
 0x1c7   :  { %341 = vsyncpa [#allocation4 + $0x1], 1 }

</bundles_post_ra>
